<compile_context>
chip_gen: v7x
topology: tpu7x:2x2x1
jax: 0.10.0
libtpu: 0.0.40
codegen_flags: <defaults>
</compile_context>

<pallas_src>
import math
import numbers

import numpy as np
import jax
import jax.numpy as jnp
from jax.experimental import pallas as pl
from jax.experimental.pallas import tpu as pltpu


def _gaussian_1d(size, std):
    coords = np.arange(size, dtype=np.float32)
    mean = (size - 1) / 2.0
    return (1.0 / (std * math.sqrt(2.0 * math.pi))) * np.exp(
        -(((coords - mean) / std) ** 2) / 2.0
    )


def _gaussian_factors(kernel_size, sigma, dim=2):
    """Normalized separable 1-D factors; their outer product equals the
    normalized 2-D kernel built by GaussianSmoothing.__init__ (dim=2)."""
    if isinstance(kernel_size, numbers.Number):
        kernel_size = [kernel_size] * dim
    if isinstance(sigma, numbers.Number):
        sigma = [sigma] * dim
    assert dim == 2, "this script implements the 2-D (spatial) case"
    kv = _gaussian_1d(kernel_size[0], sigma[0])
    kh = _gaussian_1d(kernel_size[1], sigma[1])
    kv = (kv / kv.sum()).astype(np.float32)
    kh = (kh / kh.sum()).astype(np.float32)
    return kv, kh


def _gaussian_kernel_2d(kernel_size, sigma, dim=2):
    kv, kh = _gaussian_factors(kernel_size, sigma, dim)
    return np.outer(kv, kh).astype(np.float32)


def _largest_divisor_leq(n, cap):
    cap = max(1, min(n, int(cap)))
    for d in range(cap, 0, -1):
        if n % d == 0:
            return d
    return 1


def gaussian_smoothing_pallas(x, kernel_size=3, sigma=1.0, block_channels=None):
    """Depthwise 'valid' Gaussian convolution, matching
    F.conv2d(x, weight, groups=C) with the repeated Gaussian kernel."""
    B, C, H, W = x.shape
    kv, kh = _gaussian_factors(kernel_size, sigma, dim=2)
    Kh, Kw = kv.shape[0], kh.shape[0]
    Ho, Wo = H - Kh + 1, W - Kw + 1
    assert Ho > 0 and Wo > 0

    N = B * C
    itemsize = np.dtype(x.dtype).itemsize

    if block_channels is None:
        # Per-channel VMEM cost: double-buffered input + output blocks plus the
        # live f32 intermediate of the horizontal pass.  Conservative budget
        # keeps well under the 32 MiB default scoped VMEM (and v7x 64 MiB).
        per_ch = 2 * H * W * itemsize + 2 * Ho * Wo * itemsize + H * Wo * 4
        budget = 8 * 1024 * 1024
        cap = max(1, budget // per_ch)
        nb = _largest_divisor_leq(N, cap)
        if nb == N and N > 1:
            # Keep >=2 grid steps so both v7x TensorCores get work (and the
            # DMA pipeline has something to overlap) -- but only if the split
            # doesn't collapse to tiny channel blocks.
            cand = _largest_divisor_leq(N, N // 2)
            if cand >= max(1, N // 8):
                nb = cand
    else:
        nb = block_channels
        assert N % nb == 0

    G = N // nb

    # Channels-last relayout: (B, C, H, W) -> (G, H, W, Nb); Nb sits on lanes,
    # W on sublanes, H on tile rows.
    x_t = x.reshape(G, nb, H, W).transpose(0, 2, 3, 1)

    kv_c = [float(v) for v in kv]
    kh_c = [float(v) for v in kh]

    def kernel(x_ref, o_ref):
        # x_ref: (1, H, W, Nb), o_ref: (1, Ho, Wo, Nb)

        # Horizontal (W) pass: static sublane slices straight off the VMEM ref
        # (strided vld), accumulated in f32.  Result h: (H, Wo, Nb).
        h = kh_c[0] * x_ref[0, :, 0:Wo, :].astype(jnp.float32)
        for j in range(1, Kw):
            h = h + kh_c[j] * x_ref[0, :, j:j + Wo, :].astype(jnp.float32)

        # Vertical (H) pass: shifts along the leading tile-row axis of a value
        # -> no lane/sublane data movement, just different vregs.
        out = kv_c[0] * h[0:Ho, :, :]
        for i in range(1, Kh):
            out = out + kv_c[i] * h[i:i + Ho, :, :]

        o_ref[0, :, :, :] = out.astype(o_ref.dtype)

    out_t = pl.pallas_call(
        kernel,
        out_shape=jax.ShapeDtypeStruct((G, Ho, Wo, nb), x.dtype),
        grid_spec=pltpu.PrefetchScalarGridSpec(
            num_scalar_prefetch=0,
            grid=(G,),
            in_specs=[pl.BlockSpec((1, H, W, nb), lambda g: (g, 0, 0, 0))],
            out_specs=pl.BlockSpec((1, Ho, Wo, nb), lambda g: (g, 0, 0, 0)),
        ),
        compiler_params=pltpu.CompilerParams(
            dimension_semantics=("parallel",),
        ),
    )(x_t)

    # Back to NCHW: (G, Ho, Wo, Nb) -> (B, C, Ho, Wo)
    return out_t.transpose(0, 3, 1, 2).reshape(B, C, Ho, Wo)


def _reference(x, kernel_size=3, sigma=1.0):
    """Plain-JAX reference: depthwise conv2d, valid padding, groups=C."""
    B, C, H, W = x.shape
    w2d = _gaussian_kernel_2d(kernel_size, sigma, dim=2)
    # PyTorch weight layout: (C_out=C, C_in/groups=1, Kh, Kw)
    w = jnp.broadcast_to(jnp.asarray(w2d)[None, None, :, :], (C, 1, *w2d.shape))
    return jax.lax.conv_general_dilated(
        x.astype(jnp.float32),
        w.astype(jnp.float32),
        window_strides=(1, 1),
        padding="VALID",
        dimension_numbers=("NCHW", "OIHW", "NCHW"),
        feature_group_count=C,
    ).astype(x.dtype)


if __name__ == "__main__":
    key = jax.random.PRNGKey(0)
    B, C, H, W = 2, 4, 16, 16
    kernel_size, sigma = 3, 1.0

    x = jax.random.normal(key, (B, C, H, W), dtype=jnp.float32)

    y = gaussian_smoothing_pallas(x, kernel_size=kernel_size, sigma=sigma)
    y = jax.block_until_ready(y)

    y_ref = _reference(x, kernel_size=kernel_size, sigma=sigma)
    assert y.shape == (B, C, H - kernel_size + 1, W - kernel_size + 1)
    np.testing.assert_allclose(np.asarray(y), np.asarray(y_ref), rtol=1e-5, atol=1e-5)

    print("KERNEL_OK")
</pallas_src>

<mosaic_0001>
module attributes {stable_mosaic.version = 11 : i64} {
  func.func @kernel(%arg0: i32, %arg1: memref<1x16x16x4xf32, #tpu.memory_space<vmem>>, %arg2: memref<1x14x14x4xf32, #tpu.memory_space<vmem>>) attributes {dimension_semantics = [#tpu.dimension_semantics<parallel>], iteration_bounds = array<i64: 2>, scalar_prefetch = 0 : i64, scratch_operands = 0 : i64, tpu.core_type = #tpu.core_type<tc>, window_params = [{transform_indices = @transform_0, window_bounds = array<i64: 1, 16, 16, 4>}, {transform_indices = @transform_1, window_bounds = array<i64: 1, 14, 14, 4>}]} {
    %c0 = arith.constant 0 : index
    %c0_0 = arith.constant 0 : index
    %c0_1 = arith.constant 0 : index
    %c0_2 = arith.constant 0 : index
    %0 = vector.load %arg1[%c0, %c0_0, %c0_1, %c0_2] : memref<1x16x16x4xf32, #tpu.memory_space<vmem>>, vector<1x16x14x4xf32>
    %1 = vector.shape_cast %0 : vector<1x16x14x4xf32> to vector<16x14x4xf32>
    %cst = arith.constant 0.274068624 : f32
    %2 = vector.broadcast %cst : f32 to vector<16x14x4xf32>
    %3 = arith.mulf %2, %1 : vector<16x14x4xf32>
    %c0_3 = arith.constant 0 : index
    %c0_4 = arith.constant 0 : index
    %c1 = arith.constant 1 : index
    %c0_5 = arith.constant 0 : index
    %4 = vector.load %arg1[%c0_3, %c0_4, %c1, %c0_5] : memref<1x16x16x4xf32, #tpu.memory_space<vmem>>, vector<1x16x14x4xf32>
    %5 = vector.shape_cast %4 : vector<1x16x14x4xf32> to vector<16x14x4xf32>
    %cst_6 = arith.constant 0.451862782 : f32
    %6 = vector.broadcast %cst_6 : f32 to vector<16x14x4xf32>
    %7 = arith.mulf %6, %5 : vector<16x14x4xf32>
    %8 = arith.addf %3, %7 : vector<16x14x4xf32>
    %c0_7 = arith.constant 0 : index
    %c0_8 = arith.constant 0 : index
    %c2 = arith.constant 2 : index
    %c0_9 = arith.constant 0 : index
    %9 = vector.load %arg1[%c0_7, %c0_8, %c2, %c0_9] : memref<1x16x16x4xf32, #tpu.memory_space<vmem>>, vector<1x16x14x4xf32>
    %10 = vector.shape_cast %9 : vector<1x16x14x4xf32> to vector<16x14x4xf32>
    %cst_10 = arith.constant 0.274068624 : f32
    %11 = vector.broadcast %cst_10 : f32 to vector<16x14x4xf32>
    %12 = arith.mulf %11, %10 : vector<16x14x4xf32>
    %13 = arith.addf %8, %12 : vector<16x14x4xf32>
    %14 = vector.extract_strided_slice %13 {offsets = [0, 0, 0], sizes = [14, 14, 4], strides = [1, 1, 1]} : vector<16x14x4xf32> to vector<14x14x4xf32>
    %cst_11 = arith.constant 0.274068624 : f32
    %15 = vector.broadcast %cst_11 : f32 to vector<14x14x4xf32>
    %16 = arith.mulf %15, %14 : vector<14x14x4xf32>
    %17 = vector.extract_strided_slice %13 {offsets = [1, 0, 0], sizes = [14, 14, 4], strides = [1, 1, 1]} : vector<16x14x4xf32> to vector<14x14x4xf32>
    %cst_12 = arith.constant 0.451862782 : f32
    %18 = vector.broadcast %cst_12 : f32 to vector<14x14x4xf32>
    %19 = arith.mulf %18, %17 : vector<14x14x4xf32>
    %20 = arith.addf %16, %19 : vector<14x14x4xf32>
    %21 = vector.extract_strided_slice %13 {offsets = [2, 0, 0], sizes = [14, 14, 4], strides = [1, 1, 1]} : vector<16x14x4xf32> to vector<14x14x4xf32>
    %cst_13 = arith.constant 0.274068624 : f32
    %22 = vector.broadcast %cst_13 : f32 to vector<14x14x4xf32>
    %23 = arith.mulf %22, %21 : vector<14x14x4xf32>
    %24 = arith.addf %20, %23 : vector<14x14x4xf32>
    %c0_14 = arith.constant 0 : index
    %c0_15 = arith.constant 0 : index
    %c0_16 = arith.constant 0 : index
    %c0_17 = arith.constant 0 : index
    %25 = vector.load %arg2[%c0_14, %c0_15, %c0_16, %c0_17] : memref<1x14x14x4xf32, #tpu.memory_space<vmem>>, vector<1x14x14x4xf32>
    %26 = vector.shape_cast %25 : vector<1x14x14x4xf32> to vector<14x14x4xf32>
    %27 = vector.shape_cast %24 : vector<14x14x4xf32> to vector<1x14x14x4xf32>
    tpu.vector_store %arg2[%c0_14, %c0_15, %c0_16, %c0_17], %27 {strides = array<i32>} : memref<1x14x14x4xf32, #tpu.memory_space<vmem>>, vector<1x14x14x4xf32>,
    return
  }
  func.func @transform_0(%arg0: i32) -> (i32, i32, i32, i32) {
    %c0_i32 = arith.constant 0 : i32
    %c0_i32_0 = arith.constant 0 : i32
    %c0_i32_1 = arith.constant 0 : i32
    %c0_i32_2 = arith.constant 0 : i32
    return %arg0, %c0_i32, %c0_i32_0, %c0_i32_1 : i32, i32, i32, i32
  }
  func.func @transform_1(%arg0: i32) -> (i32, i32, i32, i32) {
    %c0_i32 = arith.constant 0 : i32
    %c0_i32_0 = arith.constant 0 : i32
    %c0_i32_1 = arith.constant 0 : i32
    %c0_i32_2 = arith.constant 0 : i32
    return %arg0, %c0_i32, %c0_i32_0, %c0_i32_1 : i32, i32, i32, i32
  }
}

</mosaic_0001>

<bundles_post_ra>
// kernel: tpu_custom_call.1
= control target key start
LH: loop header
LB: loop body
LE: loop exit
PB: predicated region body
PF: predicated region fallthrough
CT: control target
= control target key end

     0   :  { %s612_s6 = smov 0   ;;  %s795_s0 = inlined_call_operand.vmem [shape: f32[2,16,16,4], index: 0, kind: input, shape index: {}]   ;;  %s796_s1 = inlined_call_operand.vmem [shape: f32[2,14,14,4], index: 1, kind: output, shape index: {}]  }
   0x1 LB: > { %s574_s7 = sadd.s32 4294967295, %s600_s6   ;;  %p578_p0 = scmp.ge.s32.totalorder %s600_s6, 1  ;;  %s600_s6 = sphi %s612_s6, %s11_s6  }
   0x2   : > { %p87_p1 = scmp.lt.s32.totalorder %s600_s6, 3 }
   0x4   : > { %p88_p2 = pnand %p578_p0, %p87_p1 }
   0x5   : > { %p107_p3 = scmp.lt.s32.totalorder (!%p88_p2), %s574_s7, 1  ;;  %vm489_vm0 = vcmask (!%p88_p2), 31744   ;;  %vm491_vm1 = vcmask (!%p88_p2), 29696  }
   0x6   : > { %91 = sbr.rel (%p88_p2) target bundleno = 107 (0x6b), region = 24 }
   0xd   : > { %s798_s7 = smov (!%p107_p3, %s574_s7), 1 }
   0xe   : > { %s584_s8 = sshll.u32 %s798_s7, 8  ;;  %s585_s12 = smul.u32 224, %s798_s7 }
   0xf   : > { %s626_s11 = scalar_lea.vmem %s795_s0, %s584_s8 }
  0x10   : > { %v117_v0 = vld [vmem:[%s626_s11] sm:$0xff]  ;;  %v119_v1 = vld [vmem:[%s626_s11 + $0x10] sm:$0xff]  ;;  %v118_v19 = vld [vmem:[%s626_s11 + $0x8] sm:$0x3f]  ;;  %s656_s15 = scalar_lea.vmem %s796_s1, %s585_s12 }
  0x11   : > { %v121_v2 = vld [vmem:[%s626_s11 + $0x20] sm:$0xff]  ;;  %v149_v3 = vmul.f32 0.27406862, %v117_v0  ;;  %v151_v4 = vmul.f32 0.27406862, %v119_v1  ;;  %v183_v7 = vld [vmem:[%s626_s11 + $0x11] sm:$0xff] }
  0x12   : > { %v153_v5 = vmul.f32 0.27406862, %v121_v2  ;;  %v181_v6 = vld [vmem:[%s626_s11 + $0x1] sm:$0xff]  ;;  %v215_v10 = vmul.f32 0.45186278, %v183_v7  ;;  %v279_v13 = vld [vmem:[%s626_s11 + $0x12] sm:$0xff] }
  0x13   : > { %v185_v8 = vld [vmem:[%s626_s11 + $0x21] sm:$0xff]  ;;  %v213_v9 = vmul.f32 0.45186278, %v181_v6  ;;  %v120_v20 = vld [vmem:[%s626_s11 + $0x18] sm:$0x3f]  ;;  %v123_v48 = vld [vmem:[%s626_s11 + $0x30] sm:$0xff] }
  0x14   : > { %v217_v11 = vmul.f32 0.45186278, %v185_v8  ;;  %v277_v12 = vld [vmem:[%s626_s11 + $0x2] sm:$0xff]  ;;  %v247_v16 = vadd.f32 %v215_v10, %v151_v4  ;;  %v311_v21 = vmul.f32 0.27406862, %v279_v13  ;;  %v187_v49 = vld [vmem:[%s626_s11 + $0x31] sm:$0xff] }
  0x15   : > { %v281_v14 = vld [vmem:[%s626_s11 + $0x22] sm:$0xff]  ;;  %v245_v15 = vadd.f32 %v213_v9, %v149_v3  ;;  %v309_v18 = vmul.f32 0.27406862, %v277_v12  ;;  %v150_v25 = vmul.f32 0.27406862, %v118_v19  ;;  %v283_v56 = vld [vmem:[%s626_s11 + $0x32] sm:$0xff] }
  0x16   : > { %v249_v17 = vadd.f32 %v217_v11, %v153_v5  ;;  %v313_v22 = vmul.f32 0.27406862, %v281_v14  ;;  %v122_v23 = vld [vmem:[%s626_s11 + $0x28] sm:$0x3f]  ;;  %v152_v26 = vmul.f32 0.27406862, %v120_v20  ;;  %v343_v28 = vadd.f32 %v311_v21, %v247_v16 }
  0x17   : > { %v341_v24 = vadd.f32 %v309_v18, %v245_v15  ;;  %v154_v27 = vmul.f32 0.27406862, %v122_v23  ;;  %v182_v30 = vld [vmem:[%s626_s11 + $0x9] sm:$0x3f]  ;;  %v184_v31 = vld [vmem:[%s626_s11 + $0x19] sm:$0x3f] }
  0x18   : > { %v345_v29 = vadd.f32 %v313_v22, %v249_v17  ;;  %v186_v32 = vld [vmem:[%s626_s11 + $0x29] sm:$0x3f]  ;;  %v214_v34 = vmul.f32 0.45186278, %v182_v30  ;;  %v216_v35 = vmul.f32 0.45186278, %v184_v31 }
  0x19   : > { %v373_v33 = vmul.f32 0.27406862, %v341_v24  ;;  %v401_v37 = vmul.f32 0.45186278, %v343_v28  ;;  %v218_v38 = vmul.f32 0.45186278, %v186_v32 }
  0x1a   : > { %v644_v36 = vmul.f32 0.27406862, %v345_v29  ;;  %v246_v39 = vadd.f32 %v214_v34, %v150_v25  ;;  %v248_v40 = vadd.f32 %v216_v35, %v152_v26  ;;  %v278_v41 = vld [vmem:[%s626_s11 + $0xa] sm:$0x3f]  ;;  %v280_v42 = vld [vmem:[%s626_s11 + $0x1a] sm:$0x3f] }
  0x1b   : > { %v282_v43 = vld [vmem:[%s626_s11 + $0x2a] sm:$0x3f]  ;;  %v429_v44 = vadd.f32 %v401_v37, %v373_v33  ;;  %v250_v45 = vadd.f32 %v218_v38, %v154_v27  ;;  %v310_v46 = vmul.f32 0.27406862, %v278_v41  ;;  %v312_v47 = vmul.f32 0.27406862, %v280_v42 }
  0x1c   : > { %v314_v50 = vmul.f32 0.27406862, %v282_v43  ;;  %v155_v51 = vmul.f32 0.27406862, %v123_v48  ;;  %v219_v52 = vmul.f32 0.45186278, %v187_v49 }
  0x1d   : > { %v461_v53 = vadd.f32 %v429_v44, %v644_v36  ;;  %v342_v54 = vadd.f32 %v310_v46, %v246_v39  ;;  %v344_v55 = vadd.f32 %v312_v47, %v248_v40  ;;  %v375_v57 = vmul.f32 0.27406862, %v343_v28  ;;  %v124_v58 = vld [vmem:[%s626_s11 + $0x38] sm:$0x3f]  ;;  %v125_v59 = vld [vmem:[%s626_s11 + $0x40] sm:$0xff]  ;;  %v127_v31 = vld [vmem:[%s626_s11 + $0x50] sm:$0xff] }
  0x1e   : > { %v346_v60 = vadd.f32 %v314_v50, %v250_v45  ;;  %v251_v61 = vadd.f32 %v219_v52, %v155_v51  ;;  %v315_v62 = vmul.f32 0.27406862, %v283_v56  ;;  %v403_v63 = vmul.f32 0.45186278, %v345_v29  ;;  %v188_v0 = vld [vmem:[%s626_s11 + $0x39] sm:$0x3f] }
  0x1f   : > { %490 = vst.msk [vmem:[%s656_s15] sm:$0xff] %vm489_vm0, %v461_v53  ;;  %v374_v1 = vmul.f32 0.27406862, %v342_v54  ;;  %v402_v2 = vmul.f32 0.45186278, %v344_v55  ;;  %v189_v16 = vld [vmem:[%s626_s11 + $0x41] sm:$0xff] }
  0x20   : > { %v156_v3 = vmul.f32 0.27406862, %v124_v58  ;;  %v378_v4 = vmul.f32 0.27406862, %v346_v60  ;;  %v347_v5 = vadd.f32 %v315_v62, %v251_v61  ;;  %v431_v6 = vadd.f32 %v403_v63, %v375_v57  ;;  %v284_v8 = vld [vmem:[%s626_s11 + $0x3a] sm:$0x3f] }
  0x21   : > { %v220_v7 = vmul.f32 0.45186278, %v188_v0  ;;  %v430_v9 = vadd.f32 %v402_v2, %v374_v1  ;;  %v316_v10 = vmul.f32 0.27406862, %v284_v8  ;;  %v376_v11 = vmul.f32 0.27406862, %v344_v55 }
  0x22   : > { %v404_v12 = vmul.f32 0.45186278, %v346_v60  ;;  %v379_v13 = vmul.f32 0.27406862, %v347_v5  ;;  %v157_v15 = vmul.f32 0.27406862, %v125_v59 }
  0x23   : > { %v252_v14 = vadd.f32 %v220_v7, %v156_v3  ;;  %v285_v17 = vld [vmem:[%s626_s11 + $0x42] sm:$0xff]  ;;  %v462_v18 = vadd.f32 %v430_v9, %v378_v4  ;;  %v221_v20 = vmul.f32 0.45186278, %v189_v16  ;;  %v405_v25 = vmul.f32 0.45186278, %v347_v5  ;;  %v191_v32 = vld [vmem:[%s626_s11 + $0x51] sm:$0xff] }
  0x24   : > { %v432_v19 = vadd.f32 %v404_v12, %v376_v11  ;;  %v317_v21 = vmul.f32 0.27406862, %v285_v17  ;;  %v126_v22 = vld [vmem:[%s626_s11 + $0x48] sm:$0x3f]  ;;  %v463_v23 = vadd.f32 %v431_v6, %v379_v13  ;;  %v159_v40 = vmul.f32 0.27406862, %v127_v31 }
  0x25   : > { %v348_v24 = vadd.f32 %v316_v10, %v252_v14  ;;  %v158_v26 = vmul.f32 0.27406862, %v126_v22  ;;  %v190_v27 = vld [vmem:[%s626_s11 + $0x49] sm:$0x3f]  ;;  %492 = vst.msk [vmem:[%s656_s15 + $0x8] sm:$0x3f] %vm491_vm1, %v462_v18  ;;  %v253_v28 = vadd.f32 %v221_v20, %v157_v15  ;;  %v433_v34 = vadd.f32 %v405_v25, %v644_v36 }
  0x26   : > { %v222_v29 = vmul.f32 0.45186278, %v190_v27  ;;  %v286_v30 = vld [vmem:[%s626_s11 + $0x4a] sm:$0x3f]  ;;  %493 = vst.msk [vmem:[%s656_s15 + $0x10] sm:$0xff] %vm489_vm0, %v463_v23  ;;  %v287_v42 = vld [vmem:[%s626_s11 + $0x52] sm:$0xff] }
  0x27   : > { %v380_v33 = vmul.f32 0.27406862, %v348_v24  ;;  %v318_v35 = vmul.f32 0.27406862, %v286_v30  ;;  %v406_v37 = vmul.f32 0.45186278, %v348_v24  ;;  %v349_v38 = vadd.f32 %v317_v21, %v253_v28 }
  0x28   : > { %v254_v39 = vadd.f32 %v222_v29, %v158_v26  ;;  %v223_v41 = vmul.f32 0.45186278, %v191_v32  ;;  %v129_v43 = vld [vmem:[%s626_s11 + $0x60] sm:$0xff]  ;;  %v319_v46 = vmul.f32 0.27406862, %v287_v42  ;;  %v131_v17 = vld [vmem:[%s626_s11 + $0x70] sm:$0xff] }
  0x29   : > { %v464_v44 = vadd.f32 %v432_v19, %v380_v33  ;;  %v434_v45 = vadd.f32 %v406_v37, %v378_v4  ;;  %v128_v47 = vld [vmem:[%s626_s11 + $0x58] sm:$0x3f]  ;;  %v381_v49 = vmul.f32 0.27406862, %v349_v38  ;;  %v407_v51 = vmul.f32 0.45186278, %v349_v38 }
  0x2a   : > { %v192_v48 = vld [vmem:[%s626_s11 + $0x59] sm:$0x3f]  ;;  %v350_v36 = vadd.f32 %v318_v35, %v254_v39  ;;  %v255_v50 = vadd.f32 %v223_v41, %v159_v40  ;;  %v160_v53 = vmul.f32 0.27406862, %v128_v47  ;;  %v193_v60 = vld [vmem:[%s626_s11 + $0x61] sm:$0xff]  ;;  %v195_v18 = vld [vmem:[%s626_s11 + $0x71] sm:$0xff] }
  0x2b   : > { %v288_v52 = vld [vmem:[%s626_s11 + $0x5a] sm:$0x3f]  ;;  %494 = vst.msk [vmem:[%s656_s15 + $0x18] sm:$0x3f] %vm491_vm1, %v464_v44  ;;  %v224_v54 = vmul.f32 0.45186278, %v192_v48  ;;  %v465_v56 = vadd.f32 %v433_v34, %v381_v49  ;;  %v435_v59 = vadd.f32 %v407_v51, %v379_v13 }
  0x2c   : > { %v320_v55 = vmul.f32 0.27406862, %v288_v52  ;;  %v382_v57 = vmul.f32 0.27406862, %v350_v36  ;;  %v351_v58 = vadd.f32 %v319_v46, %v255_v50  ;;  %v289_v61 = vld [vmem:[%s626_s11 + $0x62] sm:$0xff]  ;;  %v291_v25 = vld [vmem:[%s626_s11 + $0x72] sm:$0xff] }
  0x2d   : > { %v130_v62 = vld [vmem:[%s626_s11 + $0x68] sm:$0x3f]  ;;  %v256_v63 = vadd.f32 %v224_v54, %v160_v53  ;;  %v408_v0 = vmul.f32 0.45186278, %v350_v36  ;;  %v161_v1 = vmul.f32 0.27406862, %v129_v43 }
  0x2e   : > { %v225_v2 = vmul.f32 0.45186278, %v193_v60  ;;  %495 = vst.msk [vmem:[%s656_s15 + $0x20] sm:$0xff] %vm489_vm0, %v465_v56  ;;  %v466_v3 = vadd.f32 %v434_v45, %v382_v57  ;;  %v383_v4 = vmul.f32 0.27406862, %v351_v58  ;;  %v133_v27 = vld [vmem:[%s626_s11 + $0x80] sm:$0xff] }
  0x2f   : > { %v321_v5 = vmul.f32 0.27406862, %v289_v61  ;;  %v409_v6 = vmul.f32 0.45186278, %v351_v58  ;;  %v352_v7 = vadd.f32 %v320_v55, %v256_v63  ;;  %v436_v8 = vadd.f32 %v408_v0, %v380_v33  ;;  %v194_v11 = vld [vmem:[%s626_s11 + $0x69] sm:$0x3f] }
  0x30   : > { %v257_v9 = vadd.f32 %v225_v2, %v161_v1  ;;  %v162_v10 = vmul.f32 0.27406862, %v130_v62  ;;  %v290_v12 = vld [vmem:[%s626_s11 + $0x6a] sm:$0x3f]  ;;  %496 = vst.msk [vmem:[%s656_s15 + $0x28] sm:$0x3f] %vm491_vm1, %v466_v3  ;;  %v467_v13 = vadd.f32 %v435_v59, %v383_v4 }
  0x31   : > { %v437_v14 = vadd.f32 %v409_v6, %v381_v49  ;;  %v226_v15 = vmul.f32 0.45186278, %v194_v11  ;;  %v322_v16 = vmul.f32 0.27406862, %v290_v12  ;;  %v384_v19 = vmul.f32 0.27406862, %v352_v7 }
  0x32   : > { %v353_v20 = vadd.f32 %v321_v5, %v257_v9  ;;  %v410_v21 = vmul.f32 0.45186278, %v352_v7  ;;  %v163_v22 = vmul.f32 0.27406862, %v131_v17  ;;  %497 = vst.msk [vmem:[%s656_s15 + $0x30] sm:$0xff] %vm489_vm0, %v467_v13  ;;  %v197_v47 = vld [vmem:[%s626_s11 + $0x81] sm:$0xff] }
  0x33   : > { %v258_v23 = vadd.f32 %v226_v15, %v162_v10  ;;  %v227_v24 = vmul.f32 0.45186278, %v195_v18  ;;  %v132_v26 = vld [vmem:[%s626_s11 + $0x78] sm:$0x3f]  ;;  %v468_v28 = vadd.f32 %v436_v8, %v384_v19  ;;  %v323_v31 = vmul.f32 0.27406862, %v291_v25 }
  0x34   : > { %v385_v29 = vmul.f32 0.27406862, %v353_v20  ;;  %v438_v30 = vadd.f32 %v410_v21, %v382_v57  ;;  %v196_v32 = vld [vmem:[%s626_s11 + $0x79] sm:$0x3f]  ;;  %v411_v35 = vmul.f32 0.45186278, %v353_v20 }
  0x35   : > { %v354_v33 = vadd.f32 %v322_v16, %v258_v23  ;;  %v259_v34 = vadd.f32 %v227_v24, %v163_v22  ;;  %v164_v37 = vmul.f32 0.27406862, %v132_v26  ;;  %v292_v38 = vld [vmem:[%s626_s11 + $0x7a] sm:$0x3f]  ;;  %498 = vst.msk [vmem:[%s656_s15 + $0x38] sm:$0x3f] %vm491_vm1, %v468_v28 }
  0x36   : > { %v469_v39 = vadd.f32 %v437_v14, %v385_v29  ;;  %v228_v40 = vmul.f32 0.45186278, %v196_v32  ;;  %v324_v41 = vmul.f32 0.27406862, %v292_v38  ;;  %v165_v42 = vmul.f32 0.27406862, %v133_v27 }
  0x37   : > { %v386_v43 = vmul.f32 0.27406862, %v354_v33  ;;  %v355_v44 = vadd.f32 %v323_v31, %v259_v34  ;;  %v439_v45 = vadd.f32 %v411_v35, %v383_v4  ;;  %v412_v46 = vmul.f32 0.45186278, %v354_v33  ;;  %v293_v48 = vld [vmem:[%s626_s11 + $0x82] sm:$0xff]  ;;  %v135_v1 = vld [vmem:[%s626_s11 + $0x90] sm:$0xff] }
  0x38   : > { %499 = vst.msk [vmem:[%s656_s15 + $0x40] sm:$0xff] %vm489_vm0, %v469_v39  ;;  %v260_v49 = vadd.f32 %v228_v40, %v164_v37  ;;  %v229_v36 = vmul.f32 0.45186278, %v197_v47  ;;  %v325_v50 = vmul.f32 0.27406862, %v293_v48  ;;  %v199_v2 = vld [vmem:[%s626_s11 + $0x91] sm:$0xff] }
  0x39   : > { %v134_v51 = vld [vmem:[%s626_s11 + $0x88] sm:$0x3f]  ;;  %v470_v52 = vadd.f32 %v438_v30, %v386_v43  ;;  %v387_v53 = vmul.f32 0.27406862, %v355_v44  ;;  %v440_v54 = vadd.f32 %v412_v46, %v384_v19  ;;  %v413_v55 = vmul.f32 0.45186278, %v355_v44 }
  0x3a   : > { %v198_v56 = vld [vmem:[%s626_s11 + $0x89] sm:$0x3f]  ;;  %v356_v57 = vadd.f32 %v324_v41, %v260_v49  ;;  %v261_v58 = vadd.f32 %v229_v36, %v165_v42  ;;  %v166_v59 = vmul.f32 0.27406862, %v134_v51  ;;  %v295_v3 = vld [vmem:[%s626_s11 + $0x92] sm:$0xff]  ;;  %v201_v30 = vld [vmem:[%s626_s11 + $0xa1] sm:$0xff] }
  0x3b   : > { %v230_v60 = vmul.f32 0.45186278, %v198_v56  ;;  %v294_v61 = vld [vmem:[%s626_s11 + $0x8a] sm:$0x3f]  ;;  %500 = vst.msk [vmem:[%s656_s15 + $0x48] sm:$0x3f] %vm491_vm1, %v470_v52  ;;  %v471_v62 = vadd.f32 %v439_v45, %v387_v53  ;;  %v441_v63 = vadd.f32 %v413_v55, %v385_v29 }
  0x3c   : > { %v326_v0 = vmul.f32 0.27406862, %v294_v61  ;;  %v388_v4 = vmul.f32 0.27406862, %v356_v57  ;;  %v357_v5 = vadd.f32 %v325_v50, %v261_v58  ;;  %v414_v7 = vmul.f32 0.45186278, %v356_v57 }
  0x3d   : > { %v262_v6 = vadd.f32 %v230_v60, %v166_v59  ;;  %v136_v8 = vld [vmem:[%s626_s11 + $0x98] sm:$0x3f]  ;;  %501 = vst.msk [vmem:[%s656_s15 + $0x50] sm:$0xff] %vm489_vm0, %v471_v62  ;;  %v167_v9 = vmul.f32 0.27406862, %v135_v1  ;;  %v137_v29 = vld [vmem:[%s626_s11 + $0xa0] sm:$0xff] }
  0x3e   : > { %v231_v10 = vmul.f32 0.45186278, %v199_v2  ;;  %v327_v11 = vmul.f32 0.27406862, %v295_v3  ;;  %v472_v12 = vadd.f32 %v440_v54, %v388_v4  ;;  %v389_v13 = vmul.f32 0.27406862, %v357_v5 }
  0x3f   : > { %v358_v14 = vadd.f32 %v326_v0, %v262_v6  ;;  %v442_v15 = vadd.f32 %v414_v7, %v386_v43  ;;  %v200_v16 = vld [vmem:[%s626_s11 + $0x99] sm:$0x3f]  ;;  %v415_v19 = vmul.f32 0.45186278, %v357_v5  ;;  %v168_v20 = vmul.f32 0.27406862, %v136_v8 }
  0x40   : > { %v296_v17 = vld [vmem:[%s626_s11 + $0x9a] sm:$0x3f]  ;;  %v263_v18 = vadd.f32 %v231_v10, %v167_v9  ;;  %v232_v21 = vmul.f32 0.45186278, %v200_v16  ;;  %502 = vst.msk [vmem:[%s656_s15 + $0x58] sm:$0x3f] %vm491_vm1, %v472_v12  ;;  %v473_v22 = vadd.f32 %v441_v63, %v389_v13 }
  0x41   : > { %v390_v23 = vmul.f32 0.27406862, %v358_v14  ;;  %v328_v24 = vmul.f32 0.27406862, %v296_v17  ;;  %v416_v25 = vmul.f32 0.45186278, %v358_v14  ;;  %v443_v27 = vadd.f32 %v415_v19, %v387_v53 }
  0x42   : > { %v359_v26 = vadd.f32 %v327_v11, %v263_v18  ;;  %v264_v28 = vadd.f32 %v232_v21, %v168_v20  ;;  %v297_v31 = vld [vmem:[%s626_s11 + $0xa2] sm:$0xff]  ;;  %503 = vst.msk [vmem:[%s656_s15 + $0x60] sm:$0xff] %vm489_vm0, %v473_v22  ;;  %v169_v34 = vmul.f32 0.27406862, %v137_v29  ;;  %v233_v35 = vmul.f32 0.45186278, %v201_v30 }
  0x43   : > { %v474_v32 = vadd.f32 %v442_v15, %v390_v23  ;;  %v444_v33 = vadd.f32 %v416_v25, %v388_v4  ;;  %v138_v37 = vld [vmem:[%s626_s11 + $0xa8] sm:$0x3f]  ;;  %v329_v40 = vmul.f32 0.27406862, %v297_v31  ;;  %v139_v36 = vld [vmem:[%s626_s11 + $0xb0] sm:$0xff]  ;;  %v141_v60 = vld [vmem:[%s626_s11 + $0xc0] sm:$0xff] }
  0x44   : > { %v391_v38 = vmul.f32 0.27406862, %v359_v26  ;;  %v360_v39 = vadd.f32 %v328_v24, %v264_v28  ;;  %v417_v41 = vmul.f32 0.45186278, %v359_v26  ;;  %v265_v42 = vadd.f32 %v233_v35, %v169_v34  ;;  %v202_v44 = vld [vmem:[%s626_s11 + $0xa9] sm:$0x3f] }
  0x45   : > { %504 = vst.msk [vmem:[%s656_s15 + $0x68] sm:$0x3f] %vm491_vm1, %v474_v32  ;;  %v170_v43 = vmul.f32 0.27406862, %v138_v37  ;;  %v298_v45 = vld [vmem:[%s626_s11 + $0xaa] sm:$0x3f] }
  0x46   : > { %v475_v46 = vadd.f32 %v443_v27, %v391_v38  ;;  %v392_v47 = vmul.f32 0.27406862, %v360_v39  ;;  %v445_v48 = vadd.f32 %v417_v41, %v389_v13  ;;  %v234_v49 = vmul.f32 0.45186278, %v202_v44  ;;  %v203_v50 = vld [vmem:[%s626_s11 + $0xb1] sm:$0xff]  ;;  %v205_v10 = vld [vmem:[%s626_s11 + $0xc1] sm:$0xff] }
  0x47   : > { %v361_v51 = vadd.f32 %v329_v40, %v265_v42  ;;  %v330_v52 = vmul.f32 0.27406862, %v298_v45  ;;  %v418_v53 = vmul.f32 0.45186278, %v360_v39  ;;  %v171_v54 = vmul.f32 0.27406862, %v139_v36 }
  0x48   : > { %505 = vst.msk [vmem:[%s656_s15 + $0x70] sm:$0xff] %vm489_vm0, %v475_v46  ;;  %v476_v55 = vadd.f32 %v444_v33, %v392_v47  ;;  %v266_v56 = vadd.f32 %v234_v49, %v170_v43  ;;  %v235_v57 = vmul.f32 0.45186278, %v203_v50  ;;  %v299_v58 = vld [vmem:[%s626_s11 + $0xb2] sm:$0xff]  ;;  %v300_v5 = vld [vmem:[%s626_s11 + $0xba] sm:$0x3f] }
  0x49   : > { %v140_v59 = vld [vmem:[%s626_s11 + $0xb8] sm:$0x3f]  ;;  %v393_v61 = vmul.f32 0.27406862, %v361_v51  ;;  %v331_v62 = vmul.f32 0.27406862, %v299_v58  ;;  %v446_v1 = vadd.f32 %v418_v53, %v390_v23 }
  0x4a   : > { %v419_v63 = vmul.f32 0.45186278, %v361_v51  ;;  %506 = vst.msk [vmem:[%s656_s15 + $0x78] sm:$0x3f] %vm491_vm1, %v476_v55  ;;  %v362_v0 = vadd.f32 %v330_v52, %v266_v56  ;;  %v267_v2 = vadd.f32 %v235_v57, %v171_v54  ;;  %v172_v3 = vmul.f32 0.27406862, %v140_v59 }
  0x4b   : > { %v204_v4 = vld [vmem:[%s626_s11 + $0xb9] sm:$0x3f]  ;;  %v477_v6 = vadd.f32 %v445_v48, %v393_v61  ;;  %v332_v9 = vmul.f32 0.27406862, %v300_v5  ;;  %v301_v11 = vld [vmem:[%s626_s11 + $0xc2] sm:$0xff]  ;;  %v143_v33 = vld [vmem:[%s626_s11 + $0xd0] sm:$0xff] }
  0x4c   : > { %v447_v7 = vadd.f32 %v419_v63, %v391_v38  ;;  %v236_v8 = vmul.f32 0.45186278, %v204_v4  ;;  %v394_v12 = vmul.f32 0.27406862, %v362_v0  ;;  %v363_v13 = vadd.f32 %v331_v62, %v267_v2  ;;  %v142_v19 = vld [vmem:[%s626_s11 + $0xc8] sm:$0x3f] }
  0x4d   : > { %v420_v14 = vmul.f32 0.45186278, %v362_v0  ;;  %v173_v15 = vmul.f32 0.27406862, %v141_v60  ;;  %507 = vst.msk [vmem:[%s656_s15 + $0x80] sm:$0xff] %vm489_vm0, %v477_v6  ;;  %v207_v34 = vld [vmem:[%s626_s11 + $0xd1] sm:$0xff] }
  0x4e   : > { %v268_v16 = vadd.f32 %v236_v8, %v172_v3  ;;  %v237_v17 = vmul.f32 0.45186278, %v205_v10  ;;  %v333_v18 = vmul.f32 0.27406862, %v301_v11  ;;  %v478_v20 = vadd.f32 %v446_v1, %v394_v12  ;;  %v206_v24 = vld [vmem:[%s626_s11 + $0xc9] sm:$0x3f] }
  0x4f   : > { %v395_v21 = vmul.f32 0.27406862, %v363_v13  ;;  %v448_v22 = vadd.f32 %v420_v14, %v392_v47  ;;  %v421_v23 = vmul.f32 0.45186278, %v363_v13  ;;  %v174_v27 = vmul.f32 0.27406862, %v142_v19 }
  0x50   : > { %v364_v25 = vadd.f32 %v332_v9, %v268_v16  ;;  %v269_v26 = vadd.f32 %v237_v17, %v173_v15  ;;  %v238_v28 = vmul.f32 0.45186278, %v206_v24  ;;  %v302_v29 = vld [vmem:[%s626_s11 + $0xca] sm:$0x3f]  ;;  %508 = vst.msk [vmem:[%s656_s15 + $0x88] sm:$0x3f] %vm491_vm1, %v478_v20 }
  0x51   : > { %v479_v30 = vadd.f32 %v447_v7, %v395_v21  ;;  %v449_v31 = vadd.f32 %v421_v23, %v393_v61  ;;  %v334_v32 = vmul.f32 0.27406862, %v302_v29  ;;  %v303_v35 = vld [vmem:[%s626_s11 + $0xd2] sm:$0xff]  ;;  %v175_v42 = vmul.f32 0.27406862, %v143_v33  ;;  %v145_v61 = vld [vmem:[%s626_s11 + $0xe0] sm:$0xff] }
  0x52   : > { %v396_v37 = vmul.f32 0.27406862, %v364_v25  ;;  %v365_v38 = vadd.f32 %v333_v18, %v269_v26  ;;  %v270_v39 = vadd.f32 %v238_v28, %v174_v27  ;;  %v422_v40 = vmul.f32 0.45186278, %v364_v25  ;;  %v144_v41 = vld [vmem:[%s626_s11 + $0xd8] sm:$0x3f] }
  0x53   : > { %509 = vst.msk [vmem:[%s656_s15 + $0x90] sm:$0xff] %vm489_vm0, %v479_v30  ;;  %v239_v43 = vmul.f32 0.45186278, %v207_v34  ;;  %v335_v44 = vmul.f32 0.27406862, %v303_v35  ;;  %v209_v62 = vld [vmem:[%s626_s11 + $0xe1] sm:$0xff] }
  0x54   : > { %v480_v45 = vadd.f32 %v448_v22, %v396_v37  ;;  %v397_v46 = vmul.f32 0.27406862, %v365_v38  ;;  %v366_v47 = vadd.f32 %v334_v32, %v270_v39  ;;  %v450_v48 = vadd.f32 %v422_v40, %v394_v12  ;;  %v208_v49 = vld [vmem:[%s626_s11 + $0xd9] sm:$0x3f]  ;;  %v305_v63 = vld [vmem:[%s626_s11 + $0xe2] sm:$0xff]  ;;  %v147_v17 = vld [vmem:[%s626_s11 + $0xf0] sm:$0xff] }
  0x55   : > { %v304_v36 = vld [vmem:[%s626_s11 + $0xda] sm:$0x3f]  ;;  %v271_v50 = vadd.f32 %v239_v43, %v175_v42  ;;  %v423_v51 = vmul.f32 0.45186278, %v365_v38  ;;  %v176_v52 = vmul.f32 0.27406862, %v144_v41 }
  0x56   : > { %v240_v53 = vmul.f32 0.45186278, %v208_v49  ;;  %510 = vst.msk [vmem:[%s656_s15 + $0x98] sm:$0x3f] %vm491_vm1, %v480_v45  ;;  %v481_v54 = vadd.f32 %v449_v31, %v397_v46  ;;  %v398_v55 = vmul.f32 0.27406862, %v366_v47 }
  0x57   : > { %v336_v56 = vmul.f32 0.27406862, %v304_v36  ;;  %v424_v57 = vmul.f32 0.45186278, %v366_v47  ;;  %v367_v58 = vadd.f32 %v335_v44, %v271_v50  ;;  %v451_v59 = vadd.f32 %v423_v51, %v395_v21  ;;  %v146_v4 = vld [vmem:[%s626_s11 + $0xe8] sm:$0x3f] }
  0x58   : > { %v272_v60 = vadd.f32 %v240_v53, %v176_v52  ;;  %511 = vst.msk [vmem:[%s656_s15 + $0xa0] sm:$0xff] %vm489_vm0, %v481_v54  ;;  %v482_v0 = vadd.f32 %v450_v48, %v398_v55  ;;  %v177_v2 = vmul.f32 0.27406862, %v145_v61  ;;  %v241_v3 = vmul.f32 0.45186278, %v209_v62  ;;  %v211_v18 = vld [vmem:[%s626_s11 + $0xf1] sm:$0xff] }
  0x59   : > { %v452_v1 = vadd.f32 %v424_v57, %v396_v37  ;;  %v399_v5 = vmul.f32 0.27406862, %v367_v58  ;;  %v337_v7 = vmul.f32 0.27406862, %v305_v63  ;;  %v425_v8 = vmul.f32 0.45186278, %v367_v58 }
  0x5a   : > { %v368_v6 = vadd.f32 %v336_v56, %v272_v60  ;;  %512 = vst.msk [vmem:[%s656_s15 + $0xa8] sm:$0x3f] %vm491_vm1, %v482_v0  ;;  %v273_v9 = vadd.f32 %v241_v3, %v177_v2  ;;  %v178_v10 = vmul.f32 0.27406862, %v146_v4  ;;  %v210_v11 = vld [vmem:[%s626_s11 + $0xe9] sm:$0x3f] }
  0x5b   : > { %v306_v12 = vld [vmem:[%s626_s11 + $0xea] sm:$0x3f]  ;;  %v483_v13 = vadd.f32 %v451_v59, %v399_v5  ;;  %v453_v15 = vadd.f32 %v425_v8, %v397_v46  ;;  %v242_v16 = vmul.f32 0.45186278, %v210_v11  ;;  %v179_v22 = vmul.f32 0.27406862, %v147_v17 }
  0x5c   : > { %v400_v14 = vmul.f32 0.27406862, %v368_v6  ;;  %v369_v19 = vadd.f32 %v337_v7, %v273_v9  ;;  %v338_v20 = vmul.f32 0.27406862, %v306_v12  ;;  %v426_v21 = vmul.f32 0.45186278, %v368_v6 }
  0x5d   : > { %513 = vst.msk [vmem:[%s656_s15 + $0xb0] sm:$0xff] %vm489_vm0, %v483_v13  ;;  %v274_v24 = vadd.f32 %v242_v16, %v178_v10  ;;  %v243_v25 = vmul.f32 0.45186278, %v211_v18  ;;  %v307_v26 = vld [vmem:[%s626_s11 + $0xf2] sm:$0xff]  ;;  %v308_v37 = vld [vmem:[%s626_s11 + $0xfa] sm:$0x3f] }
  0x5e   : > { %v484_v23 = vadd.f32 %v452_v1, %v400_v14  ;;  %v148_v27 = vld [vmem:[%s626_s11 + $0xf8] sm:$0x3f]  ;;  %v457_v28 = vmul.f32 0.27406862, %v369_v19  ;;  %v339_v29 = vmul.f32 0.27406862, %v307_v26  ;;  %v454_v32 = vadd.f32 %v426_v21, %v398_v55 }
  0x5f   : > { %v427_v30 = vmul.f32 0.45186278, %v369_v19  ;;  %v370_v31 = vadd.f32 %v338_v20, %v274_v24  ;;  %v275_v33 = vadd.f32 %v243_v25, %v179_v22  ;;  %v180_v34 = vmul.f32 0.27406862, %v148_v27  ;;  %v212_v35 = vld [vmem:[%s626_s11 + $0xf9] sm:$0x3f] }
  0x60   : > { %514 = vst.msk [vmem:[%s656_s15 + $0xb8] sm:$0x3f] %vm491_vm1, %v484_v23  ;;  %v485_v38 = vadd.f32 %v457_v28, %v453_v15  ;;  %v244_v39 = vmul.f32 0.45186278, %v212_v35  ;;  %v340_v40 = vmul.f32 0.27406862, %v308_v37 }
  0x61   : > { %v458_v41 = vmul.f32 0.27406862, %v370_v31  ;;  %v371_v42 = vadd.f32 %v339_v29, %v275_v33  ;;  %v455_v43 = vadd.f32 %v427_v30, %v399_v5  ;;  %v428_v44 = vmul.f32 0.45186278, %v370_v31 }
  0x62   : > { %515 = vst.msk [vmem:[%s656_s15 + $0xc0] sm:$0xff] %vm489_vm0, %v485_v38  ;;  %v276_v45 = vadd.f32 %v244_v39, %v180_v34 }
  0x63   : > { %v486_v46 = vadd.f32 %v458_v41, %v454_v32  ;;  %v459_v47 = vmul.f32 0.27406862, %v371_v42  ;;  %v456_v49 = vadd.f32 %v428_v44, %v400_v14 }
  0x64   : > { %v372_v48 = vadd.f32 %v340_v40, %v276_v45 }
  0x65   : > { %516 = vst.msk [vmem:[%s656_s15 + $0xc8] sm:$0x3f] %vm491_vm1, %v486_v46  ;;  %v487_v36 = vadd.f32 %v459_v47, %v455_v43 }
  0x66   : > { %v460_v50 = vmul.f32 0.27406862, %v372_v48 }
  0x67   : > { %517 = vst.msk [vmem:[%s656_s15 + $0xd0] sm:$0xff] %vm489_vm0, %v487_v36 }
  0x68   : > { %v488_v51 = vadd.f32 %v460_v50, %v456_v49 }
  0x6a   : > { %518 = vst.msk [vmem:[%s656_s15 + $0xd8] sm:$0x3f] %vm491_vm1, %v488_v51 }
  0x6b PF: > { %s11_s6 = sadd.s32 1, %s600_s6  }
  0x6c   : > { %p8_p4 = scmp.ge.s32.totalorder %s11_s6, 4  }
  0x6e   :  { %10 = sbr.rel (!%p8_p4) target bundleno = 1 (0x1), region = 54 }

</bundles_post_ra>
